<compile_context>
chip_gen: v5e
topology: v5e:2x2
jax: 0.10.0
libtpu: 0.0.40
codegen_flags: <defaults>
</compile_context>

<pallas_src>
import math

import jax
import jax.numpy as jnp
from jax.experimental import pallas as pl
from jax.experimental.pallas import tpu as pltpu


# ---------------------------------------------------------------------------
# Fused LayerNorm + Linear kernel (one row tile per grid step)
# ---------------------------------------------------------------------------
def _resolved_head_kernel(s_ref, g_ref, b_ref, w_ref, wb_ref, out_ref):
    out_dim = out_ref.shape[-1]
    x = s_ref[...].astype(jnp.float32)                      # [t, C_s]
    # torch.nn.LayerNorm semantics: biased variance, eps=1e-5
    mu = jnp.mean(x, axis=-1, keepdims=True)
    var = jnp.mean((x - mu) ** 2, axis=-1, keepdims=True)
    xn = (x - mu) * jax.lax.rsqrt(var + 1e-5)
    xn = xn * g_ref[...] + b_ref[...]                       # [t, C_s]
    res = (
        jnp.dot(xn, w_ref[...], preferred_element_type=jnp.float32)
        + wb_ref[...]
    )                                                        # [t, O_pad] in vregs
    out_ref[...] = res[:, :out_dim]                          # store true width


def _round_up(a, m):
    return ((a + m - 1) // m) * m


def resolved_head(s, ln_gamma, ln_beta, w, b, *, row_tile=1024):
    """ResolvedHead forward.

    Args:
      s:        [*, N_res, C_s] single representation (any float dtype).
      ln_gamma: [C_s] LayerNorm weight.
      ln_beta:  [C_s] LayerNorm bias.
      w:        [C_s, max_num_atoms * 2] linear weight (torch weight.T).
      b:        [max_num_atoms * 2] linear bias.
    Returns:
      [*, N_res, max_num_atoms * 2] resolved logits (float32).
    """
    lead_shape = s.shape[:-1]
    C = s.shape[-1]
    out_dim = w.shape[1]

    M = int(math.prod(lead_shape)) if lead_shape else 1
    # Native dtype — no host-side upcast pass over s.
    s2 = s.reshape(M, C)

    # Row tile: multiple of 16 (bf16 sublane packing), capped for tiny M.
    # 1024 keeps double-buffered tiles well inside the scoped-VMEM default on
    # v5e/v6e/v7x at typical C_s; bump to 2048 on v7x if profiling shows
    # step-overhead domination.
    t = min(_round_up(row_tile, 16), _round_up(M, 16))

    # Pad the weight/bias lanes to 128 in VMEM only (lane-dense MXU matmul);
    # the HBM output keeps its true width.
    Op = _round_up(out_dim, 128)
    w_p = jnp.pad(w.astype(jnp.float32), ((0, 0), (0, Op - out_dim)))
    b_p = jnp.pad(b.astype(jnp.float32).reshape(1, -1), ((0, 0), (0, Op - out_dim)))

    g2 = ln_gamma.astype(jnp.float32).reshape(1, C)
    be2 = ln_beta.astype(jnp.float32).reshape(1, C)

    out = pl.pallas_call(
        _resolved_head_kernel,
        out_shape=jax.ShapeDtypeStruct((M, out_dim), jnp.float32),
        grid=(pl.cdiv(M, t),),                               # ragged tail handled
        in_specs=[
            pl.BlockSpec((t, C), lambda i: (i, 0)),          # s rows (streamed)
            pl.BlockSpec((1, C), lambda i: (0, 0)),          # LN gamma (resident)
            pl.BlockSpec((1, C), lambda i: (0, 0)),          # LN beta  (resident)
            pl.BlockSpec((C, Op), lambda i: (0, 0)),         # W        (resident)
            pl.BlockSpec((1, Op), lambda i: (0, 0)),         # bias     (resident)
        ],
        out_specs=pl.BlockSpec((t, out_dim), lambda i: (i, 0)),
        compiler_params=pltpu.CompilerParams(
            dimension_semantics=("parallel",)),
    )(s2, g2, be2, w_p, b_p)

    return out.reshape(*lead_shape, out_dim)


# ---------------------------------------------------------------------------
# Pure-JAX reference (torch LayerNorm + Linear semantics)
# ---------------------------------------------------------------------------
def resolved_head_ref(s, ln_gamma, ln_beta, w, b):
    x = s.astype(jnp.float32)
    mu = jnp.mean(x, axis=-1, keepdims=True)
    var = jnp.mean((x - mu) ** 2, axis=-1, keepdims=True)
    xn = (x - mu) * jax.lax.rsqrt(var + 1e-5) * ln_gamma + ln_beta
    return jnp.dot(xn, w) + b


if __name__ == "__main__":
    # small config consistent with the module: s is [*, N_res, C_s]
    B = 2                 # batch
    N = 16                # N_res
    C_S = 32              # c_s
    MAX_NUM_ATOMS = 4     # -> out_dim = 8
    OUT = MAX_NUM_ATOMS * 2

    key = jax.random.PRNGKey(0)
    k = jax.random.split(key, 5)

    s = jax.random.normal(k[0], (B, N, C_S), jnp.float32)
    ln_gamma = 1.0 + 0.02 * jax.random.normal(k[1], (C_S,), jnp.float32)
    ln_beta = 0.02 * jax.random.normal(k[2], (C_S,), jnp.float32)
    w = 0.02 * jax.random.normal(k[3], (C_S, OUT), jnp.float32)
    b = 0.02 * jax.random.normal(k[4], (OUT,), jnp.float32)

    # TODO(synk): is_fp16_enabled()/torch.cuda.amp autocast guard has no JAX
    # equivalent; the kernel always accumulates LN + matmul in float32, which
    # matches the guarded path regardless of input dtype.
    logits = resolved_head(s, ln_gamma, ln_beta, w, b)
    jax.block_until_ready(logits)

    assert logits.shape == (B, N, OUT)

    ref = resolved_head_ref(s, ln_gamma, ln_beta, w, b)
    assert jnp.allclose(logits, ref, atol=1e-4, rtol=1e-4), (
        float(jnp.max(jnp.abs(logits - ref))))

    # also exercise the ragged-tail + bf16 path (M not a multiple of the tile)
    s_bf16 = jax.random.normal(k[0], (3, 37, C_S), jnp.bfloat16)
    logits2 = resolved_head(s_bf16, ln_gamma, ln_beta, w, b)
    jax.block_until_ready(logits2)
    ref2 = resolved_head_ref(s_bf16, ln_gamma, ln_beta, w, b)
    assert logits2.shape == (3, 37, OUT)
    assert jnp.allclose(logits2, ref2, atol=2e-2, rtol=2e-2), (
        float(jnp.max(jnp.abs(logits2 - ref2))))

    print("KERNEL_OK")
</pallas_src>

<mosaic_0001>
module attributes {stable_mosaic.version = 11 : i64} {
  func.func @_resolved_head_kernel(%arg0: i32, %arg1: memref<32x32xf32, #tpu.memory_space<vmem>>, %arg2: memref<1x32xf32, #tpu.memory_space<vmem>>, %arg3: memref<1x32xf32, #tpu.memory_space<vmem>>, %arg4: memref<32x128xf32, #tpu.memory_space<vmem>>, %arg5: memref<1x128xf32, #tpu.memory_space<vmem>>, %arg6: memref<32x8xf32, #tpu.memory_space<vmem>>) attributes {dimension_semantics = [#tpu.dimension_semantics<parallel>], iteration_bounds = array<i64: 1>, scalar_prefetch = 0 : i64, scratch_operands = 0 : i64, tpu.core_type = #tpu.core_type<tc>, window_params = [{transform_indices = @transform_0, window_bounds = array<i64: 32, 32>}, {pipeline_mode = #tpu.pipeline_mode<synchronous>, transform_indices = @transform_1, window_bounds = array<i64: 1, 32>}, {pipeline_mode = #tpu.pipeline_mode<synchronous>, transform_indices = @transform_2, window_bounds = array<i64: 1, 32>}, {pipeline_mode = #tpu.pipeline_mode<synchronous>, transform_indices = @transform_3, window_bounds = array<i64: 32, 128>}, {pipeline_mode = #tpu.pipeline_mode<synchronous>, transform_indices = @transform_4, window_bounds = array<i64: 1, 128>}, {transform_indices = @transform_5, window_bounds = array<i64: 32, 8>}]} {
    %c0 = arith.constant 0 : index
    %c0_0 = arith.constant 0 : index
    %0 = vector.load %arg1[%c0, %c0_0] : memref<32x32xf32, #tpu.memory_space<vmem>>, vector<32x32xf32>
    %cst = arith.constant dense<0.000000e+00> : vector<32xf32>
    %1 = vector.multi_reduction <add>, %0, %cst [1] : vector<32x32xf32> to vector<32xf32>
    %2 = vector.shape_cast %1 : vector<32xf32> to vector<32x1xf32>
    %cst_1 = arith.constant 3.200000e+01 : f32
    %3 = vector.broadcast %cst_1 : f32 to vector<32x1xf32>
    %4 = arith.divf %2, %3 : vector<32x1xf32>
    %5 = vector.broadcast %4 : vector<32x1xf32> to vector<32x32xf32>
    %6 = arith.subf %0, %5 : vector<32x32xf32>
    %7 = arith.mulf %6, %6 : vector<32x32xf32>
    %cst_2 = arith.constant dense<0.000000e+00> : vector<32xf32>
    %8 = vector.multi_reduction <add>, %7, %cst_2 [1] : vector<32x32xf32> to vector<32xf32>
    %9 = vector.shape_cast %8 : vector<32xf32> to vector<32x1xf32>
    %cst_3 = arith.constant 3.200000e+01 : f32
    %10 = vector.broadcast %cst_3 : f32 to vector<32x1xf32>
    %11 = arith.divf %9, %10 : vector<32x1xf32>
    %12 = vector.broadcast %4 : vector<32x1xf32> to vector<32x32xf32>
    %13 = arith.subf %0, %12 : vector<32x32xf32>
    %cst_4 = arith.constant 9.99999974E-6 : f32
    %14 = vector.broadcast %cst_4 : f32 to vector<32x1xf32>
    %15 = arith.addf %11, %14 : vector<32x1xf32>
    %16 = math.rsqrt %15 : vector<32x1xf32>
    %17 = vector.broadcast %16 : vector<32x1xf32> to vector<32x32xf32>
    %18 = arith.mulf %13, %17 : vector<32x32xf32>
    %c0_5 = arith.constant 0 : index
    %c0_6 = arith.constant 0 : index
    %19 = vector.load %arg2[%c0_5, %c0_6] : memref<1x32xf32, #tpu.memory_space<vmem>>, vector<1x32xf32>
    %20 = vector.broadcast %19 : vector<1x32xf32> to vector<32x32xf32>
    %21 = arith.mulf %18, %20 : vector<32x32xf32>
    %c0_7 = arith.constant 0 : index
    %c0_8 = arith.constant 0 : index
    %22 = vector.load %arg3[%c0_7, %c0_8] : memref<1x32xf32, #tpu.memory_space<vmem>>, vector<1x32xf32>
    %23 = vector.broadcast %22 : vector<1x32xf32> to vector<32x32xf32>
    %24 = arith.addf %21, %23 : vector<32x32xf32>
    %c0_9 = arith.constant 0 : index
    %c0_10 = arith.constant 0 : index
    %25 = vector.load %arg4[%c0_9, %c0_10] : memref<32x128xf32, #tpu.memory_space<vmem>>, vector<32x128xf32>
    %cst_11 = arith.constant dense<0.000000e+00> : vector<32x128xf32>
    %26 = tpu.matmul %24, %25, %cst_11 {dimension_numbers = #tpu.dot_dimension_numbers<[1], [0], [0], [1], [0, 0, 1, 1], [], []>} : vector<32x32xf32>, vector<32x128xf32>, vector<32x128xf32> -> vector<32x128xf32>
    %c0_12 = arith.constant 0 : index
    %c0_13 = arith.constant 0 : index
    %27 = vector.load %arg5[%c0_12, %c0_13] : memref<1x128xf32, #tpu.memory_space<vmem>>, vector<1x128xf32>
    %28 = vector.broadcast %27 : vector<1x128xf32> to vector<32x128xf32>
    %29 = arith.addf %26, %28 : vector<32x128xf32>
    %30 = vector.extract_strided_slice %29 {offsets = [0, 0], sizes = [32, 8], strides = [1, 1]} : vector<32x128xf32> to vector<32x8xf32>
    %c0_14 = arith.constant 0 : index
    %c0_15 = arith.constant 0 : index
    %31 = vector.load %arg6[%c0_14, %c0_15] : memref<32x8xf32, #tpu.memory_space<vmem>>, vector<32x8xf32>
    tpu.vector_store %arg6[%c0_14, %c0_15], %30 {strides = array<i32>} : memref<32x8xf32, #tpu.memory_space<vmem>>, vector<32x8xf32>,
    return
  }
  func.func @transform_0(%arg0: i32) -> (i32, i32) {
    %c0_i32 = arith.constant 0 : i32
    %c0_i32_0 = arith.constant 0 : i32
    return %arg0, %c0_i32 : i32, i32
  }
  func.func @transform_1(%arg0: i32) -> (i32, i32) {
    %c0_i32 = arith.constant 0 : i32
    %c0_i32_0 = arith.constant 0 : i32
    %c0_i32_1 = arith.constant 0 : i32
    return %c0_i32, %c0_i32_0 : i32, i32
  }
  func.func @transform_2(%arg0: i32) -> (i32, i32) {
    %c0_i32 = arith.constant 0 : i32
    %c0_i32_0 = arith.constant 0 : i32
    %c0_i32_1 = arith.constant 0 : i32
    return %c0_i32, %c0_i32_0 : i32, i32
  }
  func.func @transform_3(%arg0: i32) -> (i32, i32) {
    %c0_i32 = arith.constant 0 : i32
    %c0_i32_0 = arith.constant 0 : i32
    %c0_i32_1 = arith.constant 0 : i32
    return %c0_i32, %c0_i32_0 : i32, i32
  }
  func.func @transform_4(%arg0: i32) -> (i32, i32) {
    %c0_i32 = arith.constant 0 : i32
    %c0_i32_0 = arith.constant 0 : i32
    %c0_i32_1 = arith.constant 0 : i32
    return %c0_i32, %c0_i32_0 : i32, i32
  }
  func.func @transform_5(%arg0: i32) -> (i32, i32) {
    %c0_i32 = arith.constant 0 : i32
    %c0_i32_0 = arith.constant 0 : i32
    return %arg0, %c0_i32 : i32, i32
  }
}

</mosaic_0001>

<bundles_post_ra>
// kernel: tpu_custom_call.1
= control target key start
LH: loop header
LB: loop body
LE: loop exit
PB: predicated region body
PF: predicated region fallthrough
CT: control target
= control target key end

     0   :  { %10 = vsyncpa [#allocation3], 0  ;;  %s447_s0 = inlined_call_operand.hbm [shape: f32[32,32], index: 0, kind: input, shape index: {}]   ;;  %s448_s1 = inlined_call_operand.hbm [shape: f32[1,32], index: 1, kind: input, shape index: {}]   ;;  %s449_s2 = inlined_call_operand.vmem [shape: f32[1,32], index: 2, kind: input, shape index: {}]   ;;  %s450_s3 = inlined_call_operand.hbm [shape: f32[32,128], index: 3, kind: input, shape index: {}]   ;;  %s451_s4 = inlined_call_operand.vmem [shape: f32[1,128], index: 4, kind: input, shape index: {}]   ;;  %s452_s5 = inlined_call_operand.vmem [shape: f32[32,8], index: 5, kind: output, shape index: {}]  }
   0x1   :  { %11 = vsyncpa [#allocation5], 0  ;;  %s30_s20 = sshll.u32 %s448_s1, 4  ;;  %s352_s21 = smov [#allocation4]   ;;  %s31_s20 = int_to_ptr.hbm [resolvable:$true] %s30_s20 }
   0x2   :  { %s32_s22 = sshll.u32 %s352_s21, 4  ;;  %s16_s25 = sshll.u32 %s447_s0, 4  ;;  %s33_s22 = int_to_ptr.vmem [resolvable:$true] %s32_s22  ;;  %s17_s25 = int_to_ptr.hbm [resolvable:$true] %s16_s25 }
   0x3   :  { %35 = dma.hbm_to_vmem [thread:$0]  %s31_s20, 16, %s33_s22, [#allocation5]  }
   0x4   :  { %s353_s26 = smov [#allocation2]   ;;  %s354_s28 = smov 128  }
   0x5   :  { %s18_s27 = sshll.u32 %s353_s26, 4  ;;  %s355_s29 = smov 8   ;;  %s19_s27 = int_to_ptr.vmem [resolvable:$true] %s18_s27 }
   0x6   :  { %24 = dma.hbm_to_vmem [thread:$0]  %s17_s25, 512, %s19_s27, [#allocation3], %s354_s28, %s354_s28, %s355_s29  }
   0x7   :  { %s42_s1 = sshll.u32 %s450_s3, 4  ;;  %s356_s7 = smov [#allocation6]   ;;  %s43_s1 = int_to_ptr.hbm [resolvable:$true] %s42_s1 }
   0x8   :  { %s44_s8 = sshll.u32 %s356_s7, 4  ;;  %s45_s8 = int_to_ptr.vmem [resolvable:$true] %s44_s8 }
   0x9   :  { %50 = dma.hbm_to_vmem [thread:$0]  %s43_s1, 512, %s45_s8, [#allocation5], %s354_s28, %s354_s28, %s355_s29  }
   0xa   :  { %348 = dma.done.wait [#allocation3], 512  }
   0xb   :  { %349 = vsyncadd [#allocation3], 4294966784 }
   0xc   :  { %350 = dma.done.wait [#allocation5], 528  }
   0xd   :  { %351 = vsyncadd [#allocation5], 4294966768  ;;  %vm69_vm0 = vcmask 261120   ;;  %v67_v0 = vld [vmem:[#allocation2 + $0x10] sm:$0xff]  ;;  %v65_v1 = vld [vmem:[#allocation2] sm:$0xff]  ;;  %v357_v8 = vmov 32.0  }
   0xe   :  { %v76_v2 = vsel %vm69_vm0, %v67_v0, 0.0  ;;  %v70_v3 = vsel %vm69_vm0, %v65_v1, 0.0  ;;  %v68_v4 = vld [vmem:[#allocation2 + $0x18] sm:$0xff]  ;;  %v66_v5 = vld [vmem:[#allocation2 + $0x8] sm:$0xff]  ;;  %266 = vrcp.f32 %v357_v8  ;;  %v264_v8 = vld [vmem:[%s449_s2] ss:$0 sm:$0xff] }
   0xf   :  { %77 = vadd.xlane.f32.xlu0 %v76_v2  ;;  %71 = vadd.xlane.f32.xlu1 %v70_v3  ;;  %v79_v6 = vsel %vm69_vm0, %v68_v4, 0.0  ;;  %v73_v7 = vsel %vm69_vm0, %v66_v5, 0.0  ;;  %v184_v35 = vld [vmem:[#allocation6 + $0x18] sm:$0xff]  ;;  %v183_v36 = vld [vmem:[#allocation6 + $0x10] sm:$0xff]  ;;  %v182_v37 = vld [vmem:[#allocation6 + $0x8] sm:$0xff]  ;;  %vm230_vm14 = vcmask 64512  }
  0x10   :  { %213 = vmatpush.msra.mxu0 %v184_v35  ;;  %246 = vmatpush.msra.mxu2 %v184_v35  ;;  %v181_v38 = vld [vmem:[#allocation6] sm:$0xff]  ;;  %v263_v3 = vld [vmem:[#allocation4] ss:$0 sm:$0xff] }
  0x11   :  { %245 = vmatpush.msra.mxu1 %v184_v35  ;;  %247 = vmatpush.msra.mxu3 %v184_v35 }
  0x12   :  { %214 = vmatpush.msra.mxu0 %v183_v36  ;;  %249 = vmatpush.msra.mxu2 %v183_v36 }
  0x13   :  { %248 = vmatpush.msra.mxu1 %v183_v36  ;;  %250 = vmatpush.msra.mxu3 %v183_v36 }
  0x14   :  { %v267_v9 = vpop.eup %266  ;;  %215 = vmatpush.msra.mxu0 %v182_v37  ;;  %252 = vmatpush.msra.mxu2 %v182_v37 }
  0x15   :  { %v83_v10 = vmul.f32 32.0, %v267_v9  ;;  %vm87_vm1 = vweird.f32 %v267_v9  ;;  %251 = vmatpush.msra.mxu1 %v182_v37  ;;  %253 = vmatpush.msra.mxu3 %v182_v37 }
  0x16   :  { %216 = vmatpush.msra.mxu0 %v181_v38  ;;  %255 = vmatpush.msra.mxu2 %v181_v38 }
  0x17   :  { %80 = vadd.xlane.f32.xlu0 %v79_v6  ;;  %74 = vadd.xlane.f32.xlu1 %v73_v7  ;;  %v84_v11 = vsub.f32 1.0, %v83_v10 }
  0x18   :  { %254 = vmatpush.msra.mxu1 %v181_v38  ;;  %256 = vmatpush.msra.mxu3 %v181_v38 }
  0x19   :  { %v85_v12 = vmul.f32 %v267_v9, %v84_v11 }
  0x1b   :  { %v86_v13 = vadd.f32 %v267_v9, %v85_v12 }
  0x1d   :  { %v88_v14 = vsel %vm87_vm1, %v267_v9, %v86_v13 }
  0x82   :  { %v78_v15 = vpop.xlane.xlu0 %77  ;;  %v72_v16 = vpop.xlane.xlu1 %71 }
  0x83   :  { %v91_v17 = vmul.f32 %v88_v14, %v78_v15  ;;  %v89_v18 = vmul.f32 %v88_v14, %v72_v16 }
  0x85   :  { %v401_v19 = vsub.f32 %v67_v0, %v91_v17  ;;  %v403_v20 = vsub.f32 %v65_v1, %v89_v18 }
  0x87   :  { %v99_v21 = vmul.f32 %v401_v19, %v401_v19  ;;  %v97_v22 = vmul.f32 %v403_v20, %v403_v20 }
  0x89   :  { %v107_v23 = vsel %vm69_vm0, %v99_v21, 0.0  ;;  %v101_v24 = vsel %vm69_vm0, %v97_v22, 0.0 }
  0x8a   :  { %108 = vadd.xlane.f32.xlu2 %v107_v23  ;;  %v81_v25 = vpop.xlane.xlu0 %80  ;;  %102 = vadd.xlane.f32.xlu0 %v101_v24  ;;  %v75_v26 = vpop.xlane.xlu1 %74 }
  0x8b   :  { %v92_v27 = vmul.f32 %v88_v14, %v81_v25  ;;  %v90_v28 = vmul.f32 %v88_v14, %v75_v26 }
  0x8d   :  { %v411_v29 = vsub.f32 %v68_v4, %v92_v27  ;;  %v413_v30 = vsub.f32 %v66_v5, %v90_v28 }
  0x8f   :  { %v100_v31 = vmul.f32 %v411_v29, %v411_v29  ;;  %v98_v32 = vmul.f32 %v413_v30, %v413_v30 }
  0x91   :  { %v110_v33 = vsel %vm69_vm0, %v100_v31, 0.0  ;;  %v104_v34 = vsel %vm69_vm0, %v98_v32, 0.0  ;;  %v265_v31 = vld [vmem:[%s451_s4] ss:$0 sm:$0xff] }
  0x92   :  { %111 = vadd.xlane.f32.xlu2 %v110_v33  ;;  %105 = vadd.xlane.f32.xlu1 %v104_v34 }
  0xfd   :  { %v109_v39 = vpop.xlane.xlu2 %108  ;;  %v103_v40 = vpop.xlane.xlu0 %102 }
  0xfe   :  { %v115_v41 = vmul.f32 %v109_v39, %v88_v14  ;;  %v113_v42 = vmul.f32 %v103_v40, %v88_v14 }
 0x100   :  { %v119_v43 = vadd.f32 1e-05, %v115_v41  ;;  %v117_v44 = vadd.f32 1e-05, %v113_v42 }
 0x102   :  { %268 = vrsqrt.f32 %v119_v43  ;;  %vm127_vm3 = vweird.f32 %v117_v44  ;;  %vm147_vm5 = vweird.f32 %v119_v43 }
 0x103   :  { %270 = vrsqrt.f32 %v117_v44 }
 0x105   :  { %v112_v45 = vpop.xlane.xlu2 %111  ;;  %v106_v46 = vpop.xlane.xlu1 %105 }
 0x106   :  { %v116_v47 = vmul.f32 %v112_v45, %v88_v14  ;;  %v114_v48 = vmul.f32 %v106_v46, %v88_v14 }
 0x108   :  { %v269_v49 = vpop.eup %268  ;;  %v120_v50 = vadd.f32 1e-05, %v116_v47  ;;  %v118_v51 = vadd.f32 1e-05, %v114_v48 }
 0x109   :  { %v271_v52 = vpop.eup %270  ;;  %v142_v53 = vmul.f32 %v269_v49, %v119_v43  ;;  %vm148_vm2 = vweird.f32 %v269_v49 }
 0x10a   :  { %v122_v54 = vmul.f32 %v271_v52, %v117_v44  ;;  %272 = vrsqrt.f32 %v120_v50  ;;  %vm128_vm4 = vweird.f32 %v271_v52  ;;  %vm149_vm6 = vmor %vm147_vm5, %vm148_vm2  ;;  %vm137_vm9 = vweird.f32 %v118_v51 }
 0x10b   :  { %v143_v55 = vmul.f32 %v269_v49, %v142_v53  ;;  %274 = vrsqrt.f32 %v118_v51  ;;  %vm129_vm7 = vmor %vm127_vm3, %vm128_vm4  ;;  %vm157_vm11 = vweird.f32 %v120_v50 }
 0x10c   :  { %v123_v56 = vmul.f32 %v271_v52, %v122_v54 }
 0x10d   :  { %v144_v57 = vmul.f32 0.5, %v143_v55 }
 0x10e   :  { %v124_v58 = vmul.f32 0.5, %v123_v56 }
 0x10f   :  { %v145_v59 = vsub.f32 1.5, %v144_v57 }
 0x110   :  { %v273_v60 = vpop.eup %272  ;;  %v125_v61 = vsub.f32 1.5, %v124_v58 }
 0x111   :  { %v275_v62 = vpop.eup %274  ;;  %v146_v63 = vmul.f32 %v269_v49, %v145_v59  ;;  %v152_v0 = vmul.f32 %v273_v60, %v120_v50  ;;  %vm158_vm8 = vweird.f32 %v273_v60 }
 0x112   :  { %v126_v1 = vmul.f32 %v271_v52, %v125_v61  ;;  %v132_v2 = vmul.f32 %v275_v62, %v118_v51  ;;  %vm138_vm10 = vweird.f32 %v275_v62  ;;  %vm159_vm12 = vmor %vm157_vm11, %vm158_vm8 }
 0x113   :  { %v150_v4 = vsel %vm149_vm6, %v269_v49, %v146_v63  ;;  %v153_v5 = vmul.f32 %v273_v60, %v152_v0  ;;  %vm139_vm13 = vmor %vm137_vm9, %vm138_vm10 }
 0x114   :  { %v130_v6 = vsel %vm129_vm7, %v271_v52, %v126_v1  ;;  %v133_v7 = vmul.f32 %v275_v62, %v132_v2  ;;  %v163_v9 = vmul.f32 %v150_v4, %v401_v19 }
 0x115   :  { %v154_v10 = vmul.f32 0.5, %v153_v5  ;;  %v161_v11 = vmul.f32 %v130_v6, %v403_v20 }
 0x116   :  { %v134_v12 = vmul.f32 0.5, %v133_v7  ;;  %v171_v13 = vmul.f32 %v263_v3, %v163_v9 }
 0x117   :  { %v155_v14 = vsub.f32 1.5, %v154_v10  ;;  %v169_v15 = vmul.f32 %v263_v3, %v161_v11 }
 0x118   :  { %v135_v16 = vsub.f32 1.5, %v134_v12  ;;  %v179_v17 = vadd.f32 %v264_v8, %v171_v13 }
 0x119   :  { %v156_v18 = vmul.f32 %v273_v60, %v155_v14  ;;  %v177_v21 = vadd.f32 %v264_v8, %v169_v15 }
 0x11a   :  { %v136_v22 = vmul.f32 %v275_v62, %v135_v16  ;;  %243 = vmatmul.msk.f32.vlgmr.msra.gmra.mxu2 %vm69_vm0, %v179_v17 }
 0x11b   :  { %v160_v19 = vsel %vm159_vm12, %v273_v60, %v156_v18  ;;  %241 = vmatmul.msk.f32.vlgmr.msra.gmra.mxu0 %vm69_vm0, %v177_v21 }
 0x11c   :  { %v140_v20 = vsel %vm139_vm13, %v275_v62, %v136_v22  ;;  %v164_v23 = vmul.f32 %v160_v19, %v411_v29 }
 0x11d   :  { %v162_v24 = vmul.f32 %v140_v20, %v413_v30 }
 0x11e   :  { %v172_v25 = vmul.f32 %v263_v3, %v164_v23 }
 0x11f   :  { %v170_v26 = vmul.f32 %v263_v3, %v162_v24 }
 0x120   :  { %v180_v27 = vadd.f32 %v264_v8, %v172_v25 }
 0x121   :  { %v178_v28 = vadd.f32 %v264_v8, %v170_v26 }
 0x122   :  { %244 = vmatmul.msk.f32.vlgmr.msra.gmra.mxu3 %vm69_vm0, %v180_v27 }
 0x123   :  { %242 = vmatmul.msk.f32.vlgmr.msra.gmra.mxu1 %vm69_vm0, %v178_v28 }
 0x198   :  { %v218_v32 = vpop.f32.mrf.mxu0 }
 0x199   :  { %v219_v33 = vadd.f32 %v265_v31, %v218_v32 }
 0x19b   :  { %231 = vst.msk [vmem:[%s452_s5] sm:$0xff] %vm230_vm14, %v219_v33 }
 0x19d   :  { %v224_v29 = vpop.f32.mrf.mxu2 }
 0x19e   :  { %v225_v30 = vadd.f32 %v265_v31, %v224_v29 }
 0x1a0   :  { %233 = vst.msk [vmem:[%s452_s5 + $0x10] sm:$0xff] %vm230_vm14, %v225_v30  ;;  %v221_v34 = vpop.f32.mrf.mxu1 }
 0x1a1   :  { %v222_v35 = vadd.f32 %v265_v31, %v221_v34 }
 0x1a3   :  { %232 = vst.msk [vmem:[%s452_s5 + $0x8] sm:$0xff] %vm230_vm14, %v222_v35 }
 0x1a5   :  { %v227_v36 = vpop.f32.mrf.mxu3 }
 0x1a6   :  { %v228_v37 = vadd.f32 %v265_v31, %v227_v36 }
 0x1a8   :  { %234 = vst.msk [vmem:[%s452_s5 + $0x18] sm:$0xff] %vm230_vm14, %v228_v37 }
 0x1a9   :  { %239 = vsyncpa [#allocation3], 1 }
 0x1aa   :  { %240 = vsyncpa [#allocation5], 1 }

</bundles_post_ra>
